<compile_context>
chip_gen: v7x
topology: tpu7x:2x2x1
jax: 0.10.0
libtpu: 0.0.40
codegen_flags: <defaults>
</compile_context>

<pallas_src>
import math

import jax
import jax.numpy as jnp
from jax.experimental import pallas as pl
from jax.experimental.pallas import tpu as pltpu


def make_pe_buffer(d_model: int, max_len: int = 5000, dtype=jnp.float32) -> jnp.ndarray:
    """Sinusoidal positional-encoding buffer, shape (max_len, d_model).

    Mirrors the PyTorch __init__ (interleaved sin/cos, even d_model), computed
    in f32 and cast once to the target dtype at construction time.
    """
    assert d_model % 2 == 0, "d_model must be even (matches the PyTorch reference)"
    position = jnp.arange(max_len, dtype=jnp.float32)[:, None]            # (max_len, 1)
    div_term = jnp.exp(
        jnp.arange(0, d_model, 2, dtype=jnp.float32) * (-math.log(10000.0) / d_model)
    )                                                                      # (d_model//2,)
    angles = position * div_term                                           # (max_len, d/2)
    pe = jnp.zeros((max_len, d_model), dtype=jnp.float32)
    pe = pe.at[:, 0::2].set(jnp.sin(angles))
    pe = pe.at[:, 1::2].set(jnp.cos(angles))
    return pe.astype(dtype)                                                # (max_len, d_model)


def _pe_add_kernel(x_ref, pe_ref, o_ref):
    # x_ref : (tS, B, D) VMEM tile
    # pe_ref: (tS, D)    VMEM tile -> broadcast over the batch axis in-regs
    o_ref[...] = (x_ref[...] + pe_ref[...][:, None, :]).astype(o_ref.dtype)


def _default_tile_budget_bytes() -> int:
    """Per-x-tile byte budget, gated on the chip's VMEM capacity."""
    try:
        vmem_cap = int(pltpu.get_tpu_info().vmem_capacity_bytes)
    except Exception:
        vmem_cap = 64 << 20  # conservative (v7x-sized) fallback
    # In flight per grid step (double buffered): ~2*(x + out + pe/B) tiles
    #   ->  ~4.25 * budget  for B=8/f32.
    # 6 MiB budget -> ~25.5 MiB in flight (fits 32 MiB scoped on 128-MiB chips)
    # 4 MiB budget -> ~17   MiB in flight (fits 32 MiB scoped on v7x's 64 MiB)
    return (6 << 20) if vmem_cap > (64 << 20) else (4 << 20)


def positional_encoding_forward(
    x: jnp.ndarray,
    pe: jnp.ndarray,
    *,
    tile_s: int | None = None,
    donate_x: bool = False,
) -> jnp.ndarray:
    """x: (S, B, D); pe: (max_len, D). Returns x + pe[:S] (eval-mode forward)."""
    S, B, D = x.shape
    max_len, d_pe = pe.shape
    assert S <= max_len, "sequence longer than positional-encoding buffer"
    assert d_pe == D

    itemsize = jnp.dtype(x.dtype).itemsize
    bytes_per_s_row = max(1, B * D * itemsize)

    if tile_s is None:
        tS = min(S, max(1, _default_tile_budget_bytes() // bytes_per_s_row))
    else:
        tS = min(tile_s, max(S, 8))

    pe_in = pe
    if S >= 8:
        # Keep the S-tile a multiple of 8 so the 2-D pe block (tS, D) is
        # (8,128)-dense (second-minor dim of the pe BlockSpec is tS).
        tS = max(8, (tS // 8) * 8)
    else:
        # Tiny-S edge case: single block spanning the whole (sliced) pe, so the
        # pe block equals the full array dims and the (8,128) rule is satisfied.
        tS = S
        pe_in = pe[:S]

    grid = (pl.cdiv(S, tS),)

    call_kwargs = {}
    if donate_x:
        # Caller is done with x: reuse its HBM buffer for the output.
        call_kwargs["input_output_aliases"] = {0: 0}

    return pl.pallas_call(
        _pe_add_kernel,
        out_shape=jax.ShapeDtypeStruct((S, B, D), x.dtype),
        grid_spec=pl.GridSpec(
            grid=grid,
            in_specs=[
                # x: one (tS, B, D) slab per grid step; (B, D) == full dims so
                # the (8,128) constraint is satisfied for any B, D.
                pl.BlockSpec((tS, B, D), lambda i: (i, 0, 0)),
                # pe: window the full (max_len, D) buffer -- only the first
                # cdiv(S, tS) blocks are ever read, no wrapper-side slice.
                pl.BlockSpec((tS, D), lambda i: (i, 0)),
            ],
            out_specs=pl.BlockSpec((tS, B, D), lambda i: (i, 0, 0)),
        ),
        compiler_params=pltpu.CompilerParams(
            # Each S-tile is independent -> parallel.
            dimension_semantics=("parallel",),
            # 32 MiB scoped VMEM: raises v5e's 16 MiB default so the same tile
            # budget is legal everywhere; matches the v6e/v7x defaults.
            vmem_limit_bytes=32 << 20,
        ),
        **call_kwargs,
    )(x, pe_in)


if __name__ == "__main__":
    # Lane/sublane-dense demo shapes: D multiple of 128, B = 8 (f32 sublanes).
    d_model = 128
    max_len = 64          # buffer construction identical to max_len=5000
    batch = 8

    key = jax.random.PRNGKey(0)
    pe = make_pe_buffer(d_model, max_len, dtype=jnp.float32)

    # --- case 1: aligned S, single/aligned-tile path --------------------------
    seq_len = 16
    x = jax.random.normal(key, (seq_len, batch, d_model), dtype=jnp.float32)
    out = jax.block_until_ready(positional_encoding_forward(x, pe))
    ref = x + pe[:seq_len][:, None, :]
    assert out.shape == (seq_len, batch, d_model)
    assert jnp.allclose(out, ref, atol=1e-6), "mismatch vs reference (aligned S)"

    # --- case 2: ragged S with a forced smaller tile (padded tail block) ------
    seq_len2 = 12
    x2 = jax.random.normal(
        jax.random.fold_in(key, 1), (seq_len2, batch, d_model), dtype=jnp.float32
    )
    out2 = jax.block_until_ready(positional_encoding_forward(x2, pe, tile_s=8))
    ref2 = x2 + pe[:seq_len2][:, None, :]
    assert out2.shape == (seq_len2, batch, d_model)
    assert jnp.allclose(out2, ref2, atol=1e-6), "mismatch vs reference (ragged S)"

    print("KERNEL_OK")
</pallas_src>

<mosaic_0001>
module attributes {stable_mosaic.version = 11 : i64} {
  func.func @_pe_add_kernel(%arg0: i32, %arg1: memref<16x8x128xf32, #tpu.memory_space<vmem>>, %arg2: memref<16x128xf32, #tpu.memory_space<vmem>>, %arg3: memref<16x8x128xf32, #tpu.memory_space<vmem>>) attributes {dimension_semantics = [#tpu.dimension_semantics<parallel>], iteration_bounds = array<i64: 1>, scalar_prefetch = 0 : i64, scratch_operands = 0 : i64, tpu.core_type = #tpu.core_type<tc>, window_params = [{transform_indices = @transform_0, window_bounds = array<i64: 16, 8, 128>}, {transform_indices = @transform_1, window_bounds = array<i64: 16, 128>}, {transform_indices = @transform_2, window_bounds = array<i64: 16, 8, 128>}]} {
    %c0 = arith.constant 0 : index
    %c0_0 = arith.constant 0 : index
    %c0_1 = arith.constant 0 : index
    %0 = vector.load %arg1[%c0, %c0_0, %c0_1] : memref<16x8x128xf32, #tpu.memory_space<vmem>>, vector<16x8x128xf32>
    %c0_2 = arith.constant 0 : index
    %c0_3 = arith.constant 0 : index
    %1 = vector.load %arg2[%c0_2, %c0_3] : memref<16x128xf32, #tpu.memory_space<vmem>>, vector<16x128xf32>
    %2 = vector.shape_cast %1 : vector<16x128xf32> to vector<16x1x128xf32>
    %3 = vector.broadcast %2 : vector<16x1x128xf32> to vector<16x8x128xf32>
    %4 = arith.addf %0, %3 : vector<16x8x128xf32>
    %c0_4 = arith.constant 0 : index
    %c0_5 = arith.constant 0 : index
    %c0_6 = arith.constant 0 : index
    %5 = vector.load %arg3[%c0_4, %c0_5, %c0_6] : memref<16x8x128xf32, #tpu.memory_space<vmem>>, vector<16x8x128xf32>
    tpu.vector_store %arg3[%c0_4, %c0_5, %c0_6], %4 {strides = array<i32>} : memref<16x8x128xf32, #tpu.memory_space<vmem>>, vector<16x8x128xf32>,
    return
  }
  func.func @transform_0(%arg0: i32) -> (i32, i32, i32) {
    %c0_i32 = arith.constant 0 : i32
    %c0_i32_0 = arith.constant 0 : i32
    %c0_i32_1 = arith.constant 0 : i32
    return %arg0, %c0_i32, %c0_i32_0 : i32, i32, i32
  }
  func.func @transform_1(%arg0: i32) -> (i32, i32) {
    %c0_i32 = arith.constant 0 : i32
    %c0_i32_0 = arith.constant 0 : i32
    return %arg0, %c0_i32 : i32, i32
  }
  func.func @transform_2(%arg0: i32) -> (i32, i32, i32) {
    %c0_i32 = arith.constant 0 : i32
    %c0_i32_0 = arith.constant 0 : i32
    %c0_i32_1 = arith.constant 0 : i32
    return %arg0, %c0_i32, %c0_i32_0 : i32, i32, i32
  }
}

</mosaic_0001>

<bundles_post_ra>
// kernel: tpu_custom_call.1
= control target key start
LH: loop header
LB: loop body
LE: loop exit
PB: predicated region body
PF: predicated region fallthrough
CT: control target
= control target key end

     0   :  { %7 = vsyncpa [#allocation3], 0  ;;  %s469_s0 = inlined_call_operand.hbm [shape: f32[16,8,128], index: 0, kind: input, shape index: {}]   ;;  %s470_s1 = inlined_call_operand.hbm [shape: f32[64,128], index: 1, kind: input, shape index: {}]   ;;  %s471_s2 = inlined_call_operand.hbm [shape: f32[16,8,128], index: 2, kind: output, shape index: {}]  }
   0x1   :  { %8 = vsyncpa [#allocation6], 0 }
   0x2   :  { %9 = vsyncpa [#allocation4], 0  ;;  %s368_s9 = smov [#allocation2]   ;;  %s296_s13 = scalar_lea.hbm %s469_s0, 2048 }
   0x3   :  { %s15_s10 = sshll.u32 %s368_s9, 4  ;;  %p297_p0 = scmp.ne.s32.totalorder %s469_s0, %s296_s13  ;;  %s16_s10 = int_to_ptr.vmem [resolvable:$true] %s15_s10 }
   0x4   :  { %p300_p1 = scmp.lt.u32.totalorder %s296_s13, %s469_s0 }
   0x6   :  { %p302_p2 = pnand %p300_p1, %p297_p0 }
   0x8   :  { %305 = shalt.err (!%p302_p2)
}
   0x9   :  { %s306_s18 = scalar_lea.vmem %s16_s10, 2048  ;;  %p311_p4 = scmp.lt.s32.totalorder %s16_s10, %s16_s10 }
   0xa   :  { %p307_p3 = scmp.ne.s32.totalorder %s16_s10, %s306_s18  ;;  %p312_p5 = scmp.lt.s32.totalorder %s306_s18, %s306_s18 }
   0xc   :  { %p313_p6 = por %p312_p5, %p311_p4 }
   0xe   :  { %p314_p7 = pnand %p313_p6, %p307_p3 }
  0x10   :  { %317 = shalt.err (!%p314_p7)
}
  0x11   :  { %s369_s19 = smov 128   ;;  %s370_s20 = smov 8  }
  0x12   :  { %21 = dma.hbm_to_vmem [thread:$0]  %s469_s0, 2048, %s16_s10, [#allocation3], %s369_s19, %s369_s19, %s370_s20  }
  0x13   :  { %s371_s23 = smov [#allocation5]   ;;  %s318_s27 = scalar_lea.hbm %s470_s1, 256 }
  0x14   :  { %s27_s24 = sshll.u32 %s371_s23, 4  ;;  %p319_p8 = scmp.ne.s32.totalorder %s470_s1, %s318_s27  ;;  %s28_s24 = int_to_ptr.vmem [resolvable:$true] %s27_s24 }
  0x15   :  { %s320_s4 = scalar_lea.hbm %s470_s1, 1024  ;;  %p322_p10 = scmp.lt.u32.totalorder %s318_s27, %s470_s1 }
  0x16   :  { %p321_p9 = scmp.lt.u32.totalorder %s320_s4, %s318_s27 }
  0x18   :  { %p323_p11 = por %p322_p10, %p321_p9 }
  0x1a   :  { %p324_p12 = pnand %p323_p11, %p319_p8 }
  0x1c   :  { %327 = shalt.err (!%p324_p12)
}
  0x1d   :  { %s328_s0 = scalar_lea.vmem %s28_s24, 256  ;;  %p333_p0 = scmp.lt.s32.totalorder %s28_s24, %s28_s24 }
  0x1e   :  { %p329_p13 = scmp.ne.s32.totalorder %s28_s24, %s328_s0  ;;  %p334_p1 = scmp.lt.s32.totalorder %s328_s0, %s328_s0 }
  0x20   :  { %p335_p2 = por %p334_p1, %p333_p0 }
  0x22   :  { %p336_p3 = pnand %p335_p2, %p329_p13 }
  0x24   :  { %339 = shalt.err (!%p336_p3)
}
  0x25   :  { %33 = dma.hbm_to_vmem [thread:$0]  %s470_s1, 256, %s28_s24, [#allocation6], %s369_s19, %s369_s19, %s370_s20  }
  0x26   :  { %362 = dma.done.wait [#allocation3], 2048  }
  0x27   :  { %363 = vsyncadd [#allocation3], 4294965248 }
  0x28   :  { %364 = dma.done.wait [#allocation6], 256  }
  0x29   :  { %365 = vsyncadd [#allocation6], 4294967040  ;;  %v64_v0 = vlaneseq  ;;  %v372_v1 = vmov 1966171168   ;;  %v56_v6 = vld [vmem:[#allocation5] sm:$0xff]  ;;  %v57_v13 = vld [vmem:[#allocation5 + $0x8] sm:$0xff] }
  0x2a   :  { %v62_v2 = vunpack.c.l.s4 %v372_v1  ;;  %v60_v9 = vcombine.high %v56_v6, %v56_v6  ;;  %v40_v14 = vld [vmem:[#allocation2] sm:$0xff]  ;;  %v109_v16 = vcombine.high %v57_v13, %v57_v13  ;;  %v41_v21 = vld [vmem:[#allocation2 + $0x8] sm:$0xff]  ;;  %v42_v22 = vld [vmem:[#allocation2 + $0x10] sm:$0xff]  ;;  %s373_s1 = smov [#allocation7]  }
  0x2b   :  { %v65_v3 = vshrl.u32 %v64_v0, 7  ;;  %v44_v31 = vld [vmem:[#allocation2 + $0x20] sm:$0xff]  ;;  %v43_v32 = vld [vmem:[#allocation2 + $0x18] sm:$0xff]  ;;  %v45_v41 = vld [vmem:[#allocation2 + $0x28] sm:$0xff]  ;;  %s275_s9 = sshll.u32 %s373_s1, 4  ;;  %s276_s9 = int_to_ptr.vmem [resolvable:$true] %s275_s9 }
  0x2c   :  { %v63_v4 = vunpack.c.0.s8 %v62_v2  ;;  %v48_v36 = vld [vmem:[#allocation2 + $0x40] sm:$0xff]  ;;  %v46_v42 = vld [vmem:[#allocation2 + $0x30] sm:$0xff]  ;;  %v49_v48 = vld [vmem:[#allocation2 + $0x48] sm:$0xff]  ;;  %s340_s10 = scalar_lea.vmem %s276_s9, 2048  ;;  %p345_p5 = scmp.lt.s32.totalorder %s276_s9, %s276_s9 }
  0x2d   :  { %v425_v8 = vsub.s32 0, %v65_v3  ;;  %v47_v50 = vld [vmem:[#allocation2 + $0x38] sm:$0xff]  ;;  %v50_v57 = vld [vmem:[#allocation2 + $0x50] sm:$0xff]  ;;  %v52_v2 = vld [vmem:[#allocation2 + $0x60] sm:$0xff]  ;;  %p341_p4 = scmp.ne.s32.totalorder %s276_s9, %s340_s10  ;;  %p346_p6 = scmp.lt.s32.totalorder %s340_s10, %s340_s10 }
  0x2e   :  { %v422_v5 = vsub.s32 %v63_v4, %v65_v3  ;;  %v51_v61 = vld [vmem:[#allocation2 + $0x58] sm:$0xff] }
  0x2f   :  { %p347_p7 = por %p346_p6, %p345_p5 }
  0x30   :  { %v67_v7 = vrot.slane %v56_v6, %v422_v5  ;;  %v74_v12 = vrot.slane %v60_v9, %v422_v5  ;;  %v116_v15 = vrot.slane %v57_v13, %v422_v5  ;;  %v123_v26 = vrot.slane %v109_v16, %v422_v5  ;;  %v55_v16 = vld [vmem:[#allocation2 + $0x78] sm:$0xff] }
  0x31   :  { %p348_p8 = pnand %p347_p7, %p341_p4 }
  0x32   :  { %v83_v10 = vrot.slane %v67_v7, %v422_v5  ;;  %v75_v11 = vcombine.high %v67_v7, %v67_v7  ;;  %v90_v20 = vrot.slane %v74_v12, %v422_v5  ;;  %v76_v23 = vcombine.high %v74_v12, %v74_v12 }
  0x33   :  { %v132_v24 = vrot.slane %v116_v15, %v422_v5  ;;  %v124_v25 = vcombine.high %v116_v15, %v116_v15  ;;  %v139_v62 = vrot.slane %v123_v26, %v422_v5  ;;  %v125_v63 = vcombine.high %v123_v26, %v123_v26 }
  0x34   :  { %v161_v17 = vrot.slane %v83_v10, %v425_v8  ;;  %v97_v18 = vrot.slane %v75_v11, %v422_v5  ;;  %v105_v19 = vcombine.high %v83_v10, %v83_v10  ;;  %v177_v33 = vrot.slane %v90_v20, %v425_v8  ;;  %v53_v10 = vld [vmem:[#allocation2 + $0x68] sm:$0xff]  ;;  %v54_v11 = vld [vmem:[#allocation2 + $0x70] sm:$0xff] }
  0x35   :  { %v104_v34 = vrot.slane %v76_v23, %v422_v5  ;;  %v106_v35 = vcombine.high %v90_v20, %v90_v20  ;;  %v193_v37 = vrot.slane %v132_v24, %v425_v8  ;;  %v146_v43 = vrot.slane %v124_v25, %v422_v5 }
  0x36   :  { %v238_v27 = vadd.f32 %v161_v17, %v40_v14  ;;  %v165_v28 = vrot.slane %v97_v18, %v425_v8  ;;  %v169_v29 = vrot.slane %v105_v19, %v425_v8  ;;  %v107_v30 = vcombine.high %v97_v18, %v97_v18 }
  0x37   :  { %v242_v44 = vadd.f32 %v177_v33, %v44_v31  ;;  %v181_v45 = vrot.slane %v104_v34, %v425_v8  ;;  %v185_v46 = vrot.slane %v106_v35, %v425_v8  ;;  %v108_v47 = vcombine.high %v104_v34, %v104_v34 }
  0x38   :  { %254 = vst [vmem:[#allocation7] sm:$0xff] %v238_v27  ;;  %v239_v38 = vadd.f32 %v165_v28, %v41_v21  ;;  %v240_v39 = vadd.f32 %v169_v29, %v42_v22  ;;  %v173_v40 = vrot.slane %v107_v30, %v425_v8  ;;  %v246_v51 = vadd.f32 %v193_v37, %v48_v36 }
  0x39   :  { %v197_v52 = vrot.slane %v146_v43, %v425_v8  ;;  %v154_v53 = vcombine.high %v132_v24, %v132_v24  ;;  %258 = vst [vmem:[#allocation7 + $0x20] sm:$0xff] %v242_v44  ;;  %v243_v54 = vadd.f32 %v181_v45, %v45_v41  ;;  %v244_v55 = vadd.f32 %v185_v46, %v46_v42 }
  0x3a   :  { %255 = vst [vmem:[#allocation7 + $0x8] sm:$0xff] %v239_v38  ;;  %256 = vst [vmem:[#allocation7 + $0x10] sm:$0xff] %v240_v39  ;;  %v241_v49 = vadd.f32 %v173_v40, %v43_v32  ;;  %v189_v56 = vrot.slane %v108_v47, %v425_v8  ;;  %v156_v58 = vcombine.high %v146_v43, %v146_v43 }
  0x3b   :  { %262 = vst [vmem:[#allocation7 + $0x40] sm:$0xff] %v246_v51  ;;  %v247_v59 = vadd.f32 %v197_v52, %v49_v48  ;;  %v201_v60 = vrot.slane %v154_v53, %v425_v8  ;;  %259 = vst [vmem:[#allocation7 + $0x28] sm:$0xff] %v243_v54  ;;  %v209_v4 = vrot.slane %v139_v62, %v425_v8 }
  0x3c   :  { %257 = vst [vmem:[#allocation7 + $0x18] sm:$0xff] %v241_v49  ;;  %260 = vst [vmem:[#allocation7 + $0x30] sm:$0xff] %v244_v55  ;;  %v245_v0 = vadd.f32 %v189_v56, %v47_v50  ;;  %v205_v1 = vrot.slane %v156_v58, %v425_v8  ;;  %v153_v6 = vrot.slane %v125_v63, %v422_v5 }
  0x3d   :  { %263 = vst [vmem:[#allocation7 + $0x48] sm:$0xff] %v247_v59  ;;  %v248_v3 = vadd.f32 %v201_v60, %v50_v57  ;;  %v155_v7 = vcombine.high %v139_v62, %v139_v62  ;;  %v250_v12 = vadd.f32 %v209_v4, %v52_v2 }
  0x3e   :  { %261 = vst [vmem:[#allocation7 + $0x38] sm:$0xff] %v245_v0  ;;  %v249_v9 = vadd.f32 %v205_v1, %v51_v61  ;;  %v213_v13 = vrot.slane %v153_v6, %v425_v8  ;;  %v157_v15 = vcombine.high %v153_v6, %v153_v6 }
  0x3f   :  { %264 = vst [vmem:[#allocation7 + $0x50] sm:$0xff] %v248_v3  ;;  %v217_v14 = vrot.slane %v155_v7, %v425_v8  ;;  %266 = vst [vmem:[#allocation7 + $0x60] sm:$0xff] %v250_v12 }
  0x40   :  { %265 = vst [vmem:[#allocation7 + $0x58] sm:$0xff] %v249_v9  ;;  %v251_v17 = vadd.f32 %v213_v13, %v53_v10  ;;  %v221_v5 = vrot.slane %v157_v15, %v425_v8 }
  0x41   :  { %v252_v18 = vadd.f32 %v217_v14, %v54_v11 }
  0x42   :  { %267 = vst [vmem:[#allocation7 + $0x68] sm:$0xff] %v251_v17  ;;  %v253_v19 = vadd.f32 %v221_v5, %v55_v16 }
  0x43   :  { %268 = vst [vmem:[#allocation7 + $0x70] sm:$0xff] %v252_v18 }
  0x44   :  { %269 = vst [vmem:[#allocation7 + $0x78] sm:$0xff] %v253_v19 }
  0x45   :  { %351 = shalt.err (!%p348_p8)
}
  0x46   :  { %s352_s13 = scalar_lea.hbm %s471_s2, 2048 }
  0x47   :  { %p353_p9 = scmp.ne.s32.totalorder %s471_s2, %s352_s13  ;;  %p356_p10 = scmp.lt.u32.totalorder %s352_s13, %s471_s2 }
  0x49   :  { %p358_p11 = pnand %p356_p10, %p353_p9 }
  0x4b   :  { %361 = shalt.err (!%p358_p11)
}
  0x4c   :  { %281 = dma.vmem_to_hbm [thread:$0]  %s276_s9, 2048, %s471_s2, [#allocation4], %s369_s19, %s369_s19, %s370_s20  }
  0x4d   :  { %366 = dma.done.wait [#allocation4], 2048  }
  0x4e   :  { %367 = vsyncadd [#allocation4], 4294965248 }
  0x4f   :  { %285 = vsyncpa [#allocation3], 1 }
  0x50   :  { %286 = vsyncpa [#allocation6], 1 }
  0x51   :  { %287 = vsyncpa [#allocation4], 1 }

</bundles_post_ra>
